<compile_context>
chip_gen: v6e
topology: v6e:2x2x1
jax: 0.10.0
libtpu: 0.0.40
codegen_flags: <defaults>
</compile_context>

<pallas_src>
import jax
import jax.numpy as jnp
from jax.experimental import pallas as pl
from jax.experimental.pallas import tpu as pltpu

MLP_SIZE = 32
OUT_DIM = 2


def mlp_kernel(x_ref, slab_ref, o_ref):
    # x_ref: (1, TILE) batch-on-lanes input.
    # slab_ref: (MLP_SIZE + 8, 128) packed resident operands:
    #   rows 0:32  -> [ W2^T | W3^T | w1_col b1 b2 b3 | ... ]
    #   rows 32:40 -> [ W4^T (zero-padded to 8 rows)  | b4  | ... ]
    # o_ref: (OUT_DIM, TILE) lane-dense output.
    m = MLP_SIZE
    x = x_ref[...]                                     # (1, TILE)

    w2t = slab_ref[0:m, 0:m]                           # (32, 32)
    w3t = slab_ref[0:m, m:2 * m]                       # (32, 32)
    w1c = slab_ref[0:m, 2 * m:2 * m + 1]               # (32, 1)
    b1 = slab_ref[0:m, 2 * m + 1:2 * m + 2]            # (32, 1)
    b2 = slab_ref[0:m, 2 * m + 2:2 * m + 3]            # (32, 1)
    b3 = slab_ref[0:m, 2 * m + 3:2 * m + 4]            # (32, 1)
    w4t = slab_ref[m:m + 8, 0:m]                       # (8, 32), rows >= OUT_DIM are zero
    b4 = slab_ref[m:m + OUT_DIM, 2 * m:2 * m + 1]      # (2, 1)

    # Layer 1: contraction depth K=1 -> pure VPU outer-product broadcast.
    h = jnp.maximum(w1c * x + b1, 0.0)                 # (32, TILE)
    # Layers 2/3: 32x32 MXU dots, f32 accumulation, biases broadcast on lanes.
    h = jnp.maximum(jnp.dot(w2t, h, preferred_element_type=jnp.float32) + b2, 0.0)
    h = jnp.maximum(jnp.dot(w3t, h, preferred_element_type=jnp.float32) + b3, 0.0)
    # Output layer: (8, 32) @ (32, TILE); keep only the 2 real output rows.
    out = jnp.dot(w4t, h, preferred_element_type=jnp.float32)[0:OUT_DIM, :] + b4
    o_ref[...] = out.astype(o_ref.dtype)


def mlp_forward(x, params, tile_b=16384):
    """x: (B, 1) float32 -> (B, 2) float32. params: list of 4 (W, b) pairs with W as (in, out)."""
    B = x.shape[0]
    (w1, b1), (w2, b2), (w3, b3), (w4, b4) = params
    mlp = w1.shape[1]
    out_dim = w4.shape[1]

    # ---- pack every resident operand into one lane/sublane-padded slab ----
    slab_rows = mlp + 8
    slab = jnp.zeros((slab_rows, 128), jnp.float32)
    slab = slab.at[0:mlp, 0:mlp].set(w2.T)
    slab = slab.at[0:mlp, mlp:2 * mlp].set(w3.T)
    slab = slab.at[0:mlp, 2 * mlp].set(w1[0, :])
    slab = slab.at[0:mlp, 2 * mlp + 1].set(b1)
    slab = slab.at[0:mlp, 2 * mlp + 2].set(b2)
    slab = slab.at[0:mlp, 2 * mlp + 3].set(b3)
    slab = slab.at[mlp:mlp + out_dim, 0:mlp].set(w4.T)
    slab = slab.at[mlp:mlp + out_dim, 2 * mlp].set(b4)

    # ---- transpose batch onto lanes: (B, 1) -> (1, B) is a free reshape ----
    x_t = x.reshape(1, B)

    # Lane-dense batch tile: multiple of 128, capped by tile_b.
    tile = min(tile_b, pl.cdiv(B, 128) * 128)
    tile = max(128, (tile // 128) * 128)
    num_tiles = pl.cdiv(B, tile)
    # Keep >= 2 grid steps when possible so both v7x TensorCores get work.
    if num_tiles == 1 and tile > 128:
        tile = max(128, (tile // 2 // 128) * 128)
        num_tiles = pl.cdiv(B, tile)
    # Even number of steps -> balanced megacore sharding (cheap padded work).
    if num_tiles > 1 and num_tiles % 2 == 1:
        num_tiles += 1
    b_pad = num_tiles * tile
    if b_pad != B:
        x_t = jnp.pad(x_t, ((0, 0), (0, b_pad - B)))

    out_t = pl.pallas_call(
        mlp_kernel,
        out_shape=jax.ShapeDtypeStruct((out_dim, b_pad), jnp.float32),
        grid_spec=pltpu.PrefetchScalarGridSpec(
            num_scalar_prefetch=0,
            grid=(num_tiles,),
            in_specs=[
                pl.BlockSpec((1, tile), lambda i: (0, i)),            # x lanes
                pl.BlockSpec((slab_rows, 128), lambda i: (0, 0)),     # resident weights
            ],
            out_specs=pl.BlockSpec((out_dim, tile), lambda i: (0, i)),
        ),
        compiler_params=pltpu.CompilerParams(
            dimension_semantics=("parallel",),
            vmem_limit_bytes=48 * 1024 * 1024,   # explicit: v5e default scoped is 16 MiB
        ),
    )(x_t, slab)

    # (2, b_pad) -> (B, 2): transpose (NOT a reshape), then drop padded rows.
    return out_t[:, :B].T


def init_params(key, mlp_size=32):
    """Deterministic init mimicking PyTorch nn.Linear default (U[-1/sqrt(fan_in), +])."""
    dims = [(1, mlp_size), (mlp_size, mlp_size), (mlp_size, mlp_size), (mlp_size, 2)]
    params = []
    for (fan_in, fan_out) in dims:
        key, kw, kb = jax.random.split(key, 3)
        bound = 1.0 / jnp.sqrt(jnp.float32(fan_in))
        w = jax.random.uniform(kw, (fan_in, fan_out), jnp.float32, -bound, bound)
        b = jax.random.uniform(kb, (fan_out,), jnp.float32, -bound, bound)
        params.append((w, b))
    return params


def reference_forward(x, params):
    h = x
    for i, (w, b) in enumerate(params):
        h = h @ w + b
        if i < len(params) - 1:
            h = jnp.maximum(h, 0.0)
    return h


if __name__ == "__main__":
    params = init_params(jax.random.PRNGKey(0), mlp_size=MLP_SIZE)

    # Small check (batch=8, single grid step, heavy lane padding path).
    key, kx = jax.random.split(jax.random.PRNGKey(0))
    x_small = jax.random.normal(kx, (8, 1), dtype=jnp.float32)
    out_small = jax.block_until_ready(mlp_forward(x_small, params))
    ref_small = reference_forward(x_small, params)
    assert out_small.shape == (8, 2), out_small.shape
    assert jnp.allclose(out_small, ref_small, atol=1e-5, rtol=1e-5), \
        f"max err {jnp.max(jnp.abs(out_small - ref_small))}"

    # Multi-step grid check: batch not a tile multiple -> exercises lane
    # padding, even-grid rounding, and resident-slab reuse across steps.
    key, kx2 = jax.random.split(key)
    x_big = jax.random.normal(kx2, (300, 1), dtype=jnp.float32)
    out_big = jax.block_until_ready(mlp_forward(x_big, params, tile_b=256))
    ref_big = reference_forward(x_big, params)
    assert out_big.shape == (300, 2), out_big.shape
    assert jnp.allclose(out_big, ref_big, atol=1e-5, rtol=1e-5), \
        f"max err {jnp.max(jnp.abs(out_big - ref_big))}"

    print("KERNEL_OK")
</pallas_src>

<mosaic_0001>
module attributes {stable_mosaic.version = 11 : i64} {
  func.func @mlp_kernel(%arg0: i32, %arg1: memref<1x128xf32, #tpu.memory_space<vmem>>, %arg2: memref<40x128xf32, #tpu.memory_space<vmem>>, %arg3: memref<2x128xf32, #tpu.memory_space<vmem>>) attributes {dimension_semantics = [#tpu.dimension_semantics<parallel>], iteration_bounds = array<i64: 1>, scalar_prefetch = 0 : i64, scratch_operands = 0 : i64, tpu.core_type = #tpu.core_type<tc>, window_params = [{transform_indices = @transform_0, window_bounds = array<i64: 1, 128>}, {pipeline_mode = #tpu.pipeline_mode<synchronous>, transform_indices = @transform_1, window_bounds = array<i64: 40, 128>}, {transform_indices = @transform_2, window_bounds = array<i64: 2, 128>}]} {
    %c0 = arith.constant 0 : index
    %c0_0 = arith.constant 0 : index
    %0 = vector.load %arg1[%c0, %c0_0] : memref<1x128xf32, #tpu.memory_space<vmem>>, vector<1x128xf32>
    %c0_1 = arith.constant 0 : index
    %c0_2 = arith.constant 0 : index
    %1 = vector.load %arg2[%c0_1, %c0_2] : memref<40x128xf32, #tpu.memory_space<vmem>>, vector<32x32xf32>
    %c0_3 = arith.constant 0 : index
    %c32 = arith.constant 32 : index
    %2 = vector.load %arg2[%c0_3, %c32] : memref<40x128xf32, #tpu.memory_space<vmem>>, vector<32x32xf32>
    %c0_4 = arith.constant 0 : index
    %c64 = arith.constant 64 : index
    %3 = vector.load %arg2[%c0_4, %c64] : memref<40x128xf32, #tpu.memory_space<vmem>>, vector<32x1xf32>
    %c0_5 = arith.constant 0 : index
    %c65 = arith.constant 65 : index
    %4 = vector.load %arg2[%c0_5, %c65] : memref<40x128xf32, #tpu.memory_space<vmem>>, vector<32x1xf32>
    %c0_6 = arith.constant 0 : index
    %c66 = arith.constant 66 : index
    %5 = vector.load %arg2[%c0_6, %c66] : memref<40x128xf32, #tpu.memory_space<vmem>>, vector<32x1xf32>
    %c0_7 = arith.constant 0 : index
    %c67 = arith.constant 67 : index
    %6 = vector.load %arg2[%c0_7, %c67] : memref<40x128xf32, #tpu.memory_space<vmem>>, vector<32x1xf32>
    %c32_8 = arith.constant 32 : index
    %c0_9 = arith.constant 0 : index
    %7 = vector.load %arg2[%c32_8, %c0_9] : memref<40x128xf32, #tpu.memory_space<vmem>>, vector<8x32xf32>
    %c32_10 = arith.constant 32 : index
    %c64_11 = arith.constant 64 : index
    %8 = vector.load %arg2[%c32_10, %c64_11] : memref<40x128xf32, #tpu.memory_space<vmem>>, vector<2x1xf32>
    %9 = vector.broadcast %3 : vector<32x1xf32> to vector<32x128xf32>
    %10 = vector.broadcast %0 : vector<1x128xf32> to vector<32x128xf32>
    %11 = arith.mulf %9, %10 : vector<32x128xf32>
    %12 = vector.broadcast %4 : vector<32x1xf32> to vector<32x128xf32>
    %13 = arith.addf %11, %12 : vector<32x128xf32>
    %cst = arith.constant 0.000000e+00 : f32
    %14 = vector.broadcast %cst : f32 to vector<32x128xf32>
    %15 = arith.maximumf %13, %14 : vector<32x128xf32>
    %cst_12 = arith.constant dense<0.000000e+00> : vector<32x128xf32>
    %16 = tpu.matmul %1, %15, %cst_12 {dimension_numbers = #tpu.dot_dimension_numbers<[1], [0], [0], [1], [0, 0, 1, 1], [], []>} : vector<32x32xf32>, vector<32x128xf32>, vector<32x128xf32> -> vector<32x128xf32>
    %17 = vector.broadcast %5 : vector<32x1xf32> to vector<32x128xf32>
    %18 = arith.addf %16, %17 : vector<32x128xf32>
    %cst_13 = arith.constant 0.000000e+00 : f32
    %19 = vector.broadcast %cst_13 : f32 to vector<32x128xf32>
    %20 = arith.maximumf %18, %19 : vector<32x128xf32>
    %cst_14 = arith.constant dense<0.000000e+00> : vector<32x128xf32>
    %21 = tpu.matmul %2, %20, %cst_14 {dimension_numbers = #tpu.dot_dimension_numbers<[1], [0], [0], [1], [0, 0, 1, 1], [], []>} : vector<32x32xf32>, vector<32x128xf32>, vector<32x128xf32> -> vector<32x128xf32>
    %22 = vector.broadcast %6 : vector<32x1xf32> to vector<32x128xf32>
    %23 = arith.addf %21, %22 : vector<32x128xf32>
    %cst_15 = arith.constant 0.000000e+00 : f32
    %24 = vector.broadcast %cst_15 : f32 to vector<32x128xf32>
    %25 = arith.maximumf %23, %24 : vector<32x128xf32>
    %cst_16 = arith.constant dense<0.000000e+00> : vector<8x128xf32>
    %26 = tpu.matmul %7, %25, %cst_16 {dimension_numbers = #tpu.dot_dimension_numbers<[1], [0], [0], [1], [0, 0, 1, 1], [], []>} : vector<8x32xf32>, vector<32x128xf32>, vector<8x128xf32> -> vector<8x128xf32>
    %27 = vector.extract_strided_slice %26 {offsets = [0, 0], sizes = [2, 128], strides = [1, 1]} : vector<8x128xf32> to vector<2x128xf32>
    %28 = vector.broadcast %8 : vector<2x1xf32> to vector<2x128xf32>
    %29 = arith.addf %27, %28 : vector<2x128xf32>
    %c0_17 = arith.constant 0 : index
    %c0_18 = arith.constant 0 : index
    %30 = vector.load %arg3[%c0_17, %c0_18] : memref<2x128xf32, #tpu.memory_space<vmem>>, vector<2x128xf32>
    tpu.vector_store %arg3[%c0_17, %c0_18], %29 {strides = array<i32>} : memref<2x128xf32, #tpu.memory_space<vmem>>, vector<2x128xf32>,
    return
  }
  func.func @transform_0(%arg0: i32) -> (i32, i32) {
    %c0_i32 = arith.constant 0 : i32
    %c0_i32_0 = arith.constant 0 : i32
    return %c0_i32, %arg0 : i32, i32
  }
  func.func @transform_1(%arg0: i32) -> (i32, i32) {
    %c0_i32 = arith.constant 0 : i32
    %c0_i32_0 = arith.constant 0 : i32
    %c0_i32_1 = arith.constant 0 : i32
    return %c0_i32, %c0_i32_0 : i32, i32
  }
  func.func @transform_2(%arg0: i32) -> (i32, i32) {
    %c0_i32 = arith.constant 0 : i32
    %c0_i32_0 = arith.constant 0 : i32
    return %c0_i32, %arg0 : i32, i32
  }
}

</mosaic_0001>

<bundles_post_ra>
// kernel: tpu_custom_call.1
= control target key start
LH: loop header
LB: loop body
LE: loop exit
PB: predicated region body
PF: predicated region fallthrough
CT: control target
= control target key end

     0   :  { %7 = vsyncpa [#allocation3], 0  ;;  %s662_s0 = inlined_call_operand.hbm [shape: f32[1,128], index: 0, kind: input, shape index: {}]   ;;  %s663_s1 = inlined_call_operand.hbm [shape: f32[40,128], index: 1, kind: input, shape index: {}]   ;;  %s664_s2 = inlined_call_operand.hbm [shape: f32[2,128], index: 2, kind: output, shape index: {}]  }
   0x1   :  { %8 = vsyncpa [#allocation6], 0 }
   0x2   :  { %9 = vsyncpa [#allocation4], 0  ;;  %s589_s9 = smov [#allocation2]   ;;  %s590_s11 = smov [#allocation5]  }
   0x3   :  { %s16_s10 = sshll.u32 %s589_s9, 4  ;;  %s25_s12 = sshll.u32 %s590_s11, 4  ;;  %s17_s10 = int_to_ptr.vmem [resolvable:$true] %s16_s10  ;;  %s26_s12 = int_to_ptr.vmem [resolvable:$true] %s25_s12 }
   0x4   :  { %s531_s13 = scalar_lea.vmem %s17_s10, 16  ;;  %s535_s14 = scalar_lea.vmem %s17_s10, 32 }
   0x5   :  { %p532_p0 = scmp.ne.s32.totalorder %s17_s10, %s531_s13  ;;  %p536_p1 = scmp.lt.s32.totalorder %s17_s10, %s17_s10 }
   0x6   :  { %p537_p2 = scmp.lt.s32.totalorder %s535_s14, %s531_s13 }
   0x8   :  { %p538_p3 = por %p537_p2, %p536_p1 }
   0xa   :  { %p539_p4 = pnand %p538_p3, %p532_p0 }
   0xc   :  { %542 = shalt.err (!%p539_p4)
}
   0xd   :  { %19 = dma.hbm_to_vmem [thread:$0]  %s662_s0, 16, %s17_s10, [#allocation3]  }
   0xe   :  { %s551_s17 = scalar_lea.vmem %s26_s12, 640  ;;  %p556_p6 = scmp.lt.s32.totalorder %s26_s12, %s26_s12 }
   0xf   :  { %p552_p5 = scmp.ne.s32.totalorder %s26_s12, %s551_s17  ;;  %p557_p7 = scmp.lt.s32.totalorder %s551_s17, %s551_s17 }
  0x11   :  { %p558_p8 = por %p557_p7, %p556_p6 }
  0x13   :  { %p559_p9 = pnand %p558_p8, %p552_p5 }
  0x15   :  { %562 = shalt.err (!%p559_p9)
}
  0x16   :  { %s591_s18 = smov 128   ;;  %s592_s19 = smov 8  }
  0x17   :  { %31 = dma.hbm_to_vmem [thread:$0]  %s663_s1, 640, %s26_s12, [#allocation6], %s591_s18, %s591_s18, %s592_s19  }
  0x18   :  { %583 = dma.done.wait [#allocation3], 16  }
  0x19   :  { %584 = vsyncadd [#allocation3], 4294967280 }
  0x1a   :  { %585 = dma.done.wait [#allocation6], 640  }
  0x1b   :  { %586 = vsyncadd [#allocation6], 4294966656  ;;  %v593_v0 = vmov 65   ;;  %v594_v1 = vmov 64   ;;  %v623_v2 = vld [vmem:[#allocation5 + $0x18] sm:$0xff]  ;;  %v627_v3 = vld [vmem:[#allocation5 + $0x10] sm:$0xff] }
  0x1c   :  { %513 = vset.pattern.permute.xlu1 %v593_v0  ;;  %512 = vset.pattern.permute.xlu0 %v594_v1  ;;  %v629_v4 = vld [vmem:[#allocation5 + $0x8] sm:$0xff]  ;;  %v39_v5 = vld [vmem:[#allocation5] sm:$0xff]  ;;  %vm115_vm0 = vcmask 261120   ;;  %v595_v6 = vmov 66   ;;  %s596_s0 = smov 96   ;;  %v597_v30 = vmov 67  }
  0x1d   :  { %88 = vperm.xlu1 %513, %v623_v2   ;;  %62 = vperm.xlu0 %512, %v623_v2   ;;  %v430_v7 = vld [vmem:[#allocation2] ss:$0 sm:$0xff]  ;;  %v598_v49 = vmov 0.0   ;;  %vm599_vm1 = vmmov 0   ;;  %v44_v50 = vld [vmem:[#allocation5 + $0x20] sm:$0x3] }
  0x1e   :  { %469 = vmatprep.mubr.msk.f32.mxu0 %vm115_vm0, %v39_v5  ;;  %s600_s1 = smov [#allocation7]  }
  0x1f   :  { %s420_s22 = sshll.u32 %s600_s1, 4  ;;  %s421_s22 = int_to_ptr.vmem [resolvable:$true] %s420_s22 }
  0x20   :  { %s563_s23 = scalar_lea.vmem %s421_s22, 32  ;;  %p568_p11 = scmp.lt.s32.totalorder %s421_s22, %s421_s22 }
  0x21   :  { %514 = vset.pattern.permute.xlu1 %v594_v1  ;;  %57 = vperm.xlu0 %512, %v627_v3   ;;  %p564_p10 = scmp.ne.s32.totalorder %s421_s22, %s563_s23  ;;  %p569_p12 = scmp.lt.s32.totalorder %s563_s23, %s563_s23 }
  0x22   :  { %52 = vperm.xlu1 %514, %v629_v4  }
  0x23   :  { %p570_p13 = por %p569_p12, %p568_p11 }
  0x25   :  { %515 = vset.pattern.permute.xlu0 %v593_v0  ;;  %p571_p0 = pnand %p570_p13, %p564_p10 }
  0x26   :  { %84 = vperm.xlu0 %515, %v627_v3   ;;  %47 = vperm.xlu1 %514, %v39_v5  }
  0x2a   :  { %76 = vperm.xlu0 %515, %v39_v5   ;;  %516 = vset.pattern.permute.xlu1 %v593_v0 }
  0x2b   :  { %80 = vperm.xlu1 %516, %v629_v4  }
  0x2e   :  { %518 = vset.pattern.permute.xlu0 %v595_v6 }
  0x2f   :  { %517 = vset.pattern.permute.xlu1 %v595_v6  ;;  %108 = vperm.xlu0 %518, %v627_v3  }
  0x30   :  { %112 = vperm.xlu1 %517, %v623_v2  }
  0x33   :  { %229 = vrot.lane.b32.xlu0 %v39_v5, %s596_s0 }
  0x34   :  { %104 = vperm.xlu1 %517, %v629_v4   ;;  %519 = vset.pattern.permute.xlu0 %v597_v30 }
  0x37   :  { %233 = vrot.lane.b32.xlu0 %v627_v3, %s596_s0 }
  0x38   :  { %100 = vperm.xlu1 %517, %v39_v5  }
  0x3b   :  { %226 = vperm.xlu0 %519, %v623_v2  }
  0x3c   :  { %231 = vrot.lane.b32.xlu1 %v629_v4, %s596_s0 }
  0x3d   :  { %520 = vset.pattern.permute.xlu1 %v597_v30 }
  0x3f   :  { %214 = vperm.xlu0 %519, %v39_v5  }
  0x40   :  { %235 = vrot.lane.b32.xlu1 %v623_v2, %s596_s0 }
  0x43   :  { %522 = vset.pattern.permute.xlu0 %v594_v1 }
  0x44   :  { %222 = vperm.xlu1 %520, %v627_v3  }
  0x48   :  { %218 = vperm.xlu1 %520, %v629_v4  }
  0x4c   :  { %521 = vset.pattern.permute.xlu1 %v594_v1 }
  0x4d   :  { %409 = vperm.xlu1 %521, %v44_v50  }
  0x98   :  { %v89_v8 = vpop.permute.xlu1 %88  ;;  %v63_v9 = vpop.permute.xlu0 %62 }
  0x99   :  { %v74_v10 = vmul.f32 %v430_v7, %v63_v9 }
  0x9b   :  { %v94_v11 = vadd.f32 %v89_v8, %v74_v10 }
  0x9c   :  { %v58_v12 = vpop.permute.xlu0 %57 }
  0x9d   :  { %v53_v13 = vpop.permute.xlu1 %52  ;;  %v98_v14 = vmax.f32 %v94_v11, 0.0  ;;  %v73_v15 = vmul.f32 %v430_v7, %v58_v12 }
  0x9e   :  { %v72_v20 = vmul.f32 %v430_v7, %v53_v13 }
  0x9f   :  { %461 = vmatprep.subr.mxu0 %v98_v14 }
  0xa0   :  { %462 = vmatpush3.msra.mxu0 %v98_v14 }
  0xa1   :  { %v85_v16 = vpop.permute.xlu0 %84  ;;  %v48_v17 = vpop.permute.xlu1 %47 }
  0xa2   :  { %v93_v18 = vadd.f32 %v85_v16, %v73_v15  ;;  %v71_v21 = vmul.f32 %v430_v7, %v48_v17 }
  0xa4   :  { %v97_v19 = vmax.f32 %v93_v18, 0.0 }
  0xa5   :  { %v77_v22 = vpop.permute.xlu0 %76 }
  0xa6   :  { %v81_v23 = vpop.permute.xlu1 %80  ;;  %463 = vmatprep.subr.mxu0 %v97_v19  ;;  %v91_v24 = vadd.f32 %v77_v22, %v71_v21 }
  0xa7   :  { %v92_v25 = vadd.f32 %v81_v23, %v72_v20  ;;  %464 = vmatpush3.msra.mxu0 %v97_v19 }
  0xa8   :  { %v95_v27 = vmax.f32 %v91_v24, 0.0 }
  0xa9   :  { %v96_v26 = vmax.f32 %v92_v25, 0.0 }
  0xaa   :  { %v109_v28 = vpop.permute.xlu0 %108 }
  0xab   :  { %465 = vmatprep.subr.mxu0 %v96_v26  ;;  %v113_v31 = vpop.permute.xlu1 %112 }
  0xac   :  { %466 = vmatpush3.msra.mxu0 %v96_v26 }
  0xad   :  { %467 = vmatprep.subr.mxu0 %v95_v27 }
  0xae   :  { %468 = vmatpush3.msra.mxu0 %v95_v27  ;;  %v230_v29 = vpop.permute.xlu0 %229 }
  0xaf   :  { %470 = vmatmul.mubr.msk.f32.vlgmr.msra.gmra.mxu0 %vm115_vm0, %v629_v4  ;;  %483 = vmatprep.mubr.msk.f32.mxu1 %vm115_vm0, %v230_v29  ;;  %v105_v32 = vpop.permute.xlu1 %104 }
  0xb0   :  { %472 = vmatprep.mubr.msk.f32.mxu0 %vm115_vm0, %v627_v3  ;;  %489 = vmatprep.subr.mxu0 %v598_v49  ;;  %v43_v3 = vld [vmem:[#allocation5 + $0x20] sm:$0xff] }
  0xb2   :  { %v234_v47 = vpop.permute.xlu0 %233 }
  0xb3   :  { %473 = vmatmul.mubr.msk.f32.gmra.mxu0 %vm115_vm0, %v623_v2  ;;  %v101_v37 = vpop.permute.xlu1 %100 }
  0xb4   :  { %497 = vmatprep.mubr.msk.f32.mxu0 %vm599_vm1, %v598_v49 }
  0xb6   :  { %v227_v52 = vpop.permute.xlu0 %226 }
  0xb7   :  { %v232_v45 = vpop.permute.xlu1 %231 }
  0xba   :  { %v215_v58 = vpop.permute.xlu0 %214 }
  0xbb   :  { %v236_v48 = vpop.permute.xlu1 %235 }
  0xbf   :  { %v223_v51 = vpop.permute.xlu1 %222 }
  0xc3   :  { %v219_v55 = vpop.permute.xlu1 %218 }
  0xc8   :  { %v410_v4 = vpop.permute.xlu1 %409 }
 0x16f   :  { %v471_v33 = vpop.f32.mrf.mxu0 }
 0x170   :  { %v196_v39 = vadd.f32 %v471_v33, %v105_v32 }
 0x171   :  { %v190_v34 = vpop.f32.mrf.mxu0 }
 0x172   :  { %v191_v42 = vadd.f32 %v190_v34, %v101_v37  ;;  %v210_v44 = vmax.f32 %v196_v39, 0.0 }
 0x173   :  { %v474_v35 = vpop.f32.mrf.mxu0 }
 0x174   :  { %v206_v36 = vadd.f32 %v474_v35, %v113_v31  ;;  %v209_v46 = vmax.f32 %v191_v42, 0.0 }
 0x175   :  { %v200_v38 = vpop.f32.mrf.mxu0 }
 0x176   :  { %v212_v40 = vmax.f32 %v206_v36, 0.0  ;;  %v201_v41 = vadd.f32 %v200_v38, %v109_v28 }
 0x178   :  { %v211_v43 = vmax.f32 %v201_v41, 0.0  ;;  %475 = vmatprep.subr.mxu1 %v212_v40 }
 0x179   :  { %476 = vmatpush3.msra.mxu1 %v212_v40 }
 0x17a   :  { %477 = vmatprep.subr.mxu1 %v211_v43 }
 0x17b   :  { %478 = vmatpush3.msra.mxu1 %v211_v43 }
 0x17c   :  { %479 = vmatprep.subr.mxu1 %v210_v44 }
 0x17d   :  { %480 = vmatpush3.msra.mxu1 %v210_v44 }
 0x17e   :  { %481 = vmatprep.subr.mxu1 %v209_v46 }
 0x17f   :  { %482 = vmatpush3.msra.mxu1 %v209_v46 }
 0x180   :  { %484 = vmatmul.mubr.msk.f32.vlgmr.msra.gmra.mxu1 %vm115_vm0, %v232_v45 }
 0x181   :  { %486 = vmatprep.mubr.msk.f32.mxu1 %vm115_vm0, %v234_v47 }
 0x184   :  { %487 = vmatmul.mubr.msk.f32.gmra.mxu1 %vm115_vm0, %v236_v48 }
 0x240   :  { %v485_v53 = vpop.f32.mrf.mxu1 }
 0x241   :  { %v317_v60 = vadd.f32 %v485_v53, %v219_v55 }
 0x242   :  { %v311_v54 = vpop.f32.mrf.mxu1 }
 0x243   :  { %v312_v63 = vadd.f32 %v311_v54, %v215_v58  ;;  %v331_v1 = vmax.f32 %v317_v60, 0.0 }
 0x244   :  { %v488_v56 = vpop.f32.mrf.mxu1 }
 0x245   :  { %v327_v57 = vadd.f32 %v488_v56, %v227_v52  ;;  %v330_v2 = vmax.f32 %v312_v63, 0.0 }
 0x246   :  { %v321_v59 = vpop.f32.mrf.mxu1 }
 0x247   :  { %v333_v61 = vmax.f32 %v327_v57, 0.0  ;;  %v322_v62 = vadd.f32 %v321_v59, %v223_v51 }
 0x249   :  { %v332_v0 = vmax.f32 %v322_v62, 0.0  ;;  %490 = vmatpush3.msra.mxu0 %v333_v61 }
 0x24a   :  { %491 = vmatprep.subr.mxu0 %v598_v49 }
 0x24b   :  { %492 = vmatpush3.msra.mxu0 %v332_v0 }
 0x24c   :  { %493 = vmatprep.subr.mxu0 %v598_v49 }
 0x24d   :  { %494 = vmatpush3.msra.mxu0 %v331_v1 }
 0x24e   :  { %495 = vmatprep.subr.mxu0 %v598_v49 }
 0x24f   :  { %496 = vmatpush3.msra.mxu0 %v330_v2 }
 0x250   :  { %498 = vmatmul.mubr.msk.f32.vlgmr.msra.gmra.mxu0 %vm115_vm0, %v43_v3 }
 0x310   :  { %v403_v5 = vpop.f32.mrf.mxu0 }
 0x311   :  { %v412_v6 = vadd.f32 %v410_v4, %v403_v5 }
 0x312   :  { %v499_v7 = vpop.f32.mrf.mxu0 }
 0x313   :  { %413 = vst [vmem:[#allocation7] sm:$0x3] %v412_v6 }
 0x314   :  { %574 = shalt.err (!%p571_p0)
}
 0x315   :  { %423 = dma.vmem_to_hbm [thread:$0]  %s421_s22, 32, %s664_s2, [#allocation4]  }
 0x316   :  { %587 = dma.done.wait [#allocation4], 32  }
 0x317   :  { %588 = vsyncadd [#allocation4], 4294967264 }
 0x318   :  { %427 = vsyncpa [#allocation3], 1 }
 0x319   :  { %428 = vsyncpa [#allocation6], 1 }
 0x31a   :  { %429 = vsyncpa [#allocation4], 1 }

</bundles_post_ra>
